<compile_context>
chip_gen: v7x
topology: tpu7x:2x2x1
jax: 0.10.0
libtpu: 0.0.40
codegen_flags: <defaults>
</compile_context>

<pallas_src>
import functools

import jax
import jax.numpy as jnp
from jax.experimental import pallas as pl
from jax.experimental.pallas import tpu as pltpu

VMEM_SPEC = pl.BlockSpec(memory_space=pltpu.MemorySpace.VMEM)
_BN_EPS = 1e-5
_LANE = 128


# ------------------- static (outside-jit) weight transforms ----------------- #

def _round_up(x, m):
    return ((x + m - 1) // m) * m


def _conv1d_dense(w, lin, stride, padding):
    """Conv1d weight (Cout, Cin, K) -> dense (Lin*Cin, Lout*Cout), l-major/c-minor."""
    cout, cin, k = w.shape
    lout = (lin + 2 * padding - k) // stride + 1
    t = jnp.zeros((lin * cin, lout * cout), jnp.float32)
    for lo in range(lout):
        for kk in range(k):
            li = lo * stride - padding + kk
            if 0 <= li < lin:
                t = t.at[li * cin:(li + 1) * cin,
                         lo * cout:(lo + 1) * cout].set(w[:, :, kk].T)
    return t, lout


def _convt1d_dense(w, lin, stride, padding):
    """ConvTranspose1d weight (Cin, Cout, K) -> dense (Lin*Cin, Lout*Cout)."""
    cin, cout, k = w.shape
    lout = (lin - 1) * stride - 2 * padding + k
    t = jnp.zeros((lin * cin, lout * cout), jnp.float32)
    for li in range(lin):
        for kk in range(k):
            lo = li * stride - padding + kk
            if 0 <= lo < lout:
                t = t.at[li * cin:(li + 1) * cin,
                         lo * cout:(lo + 1) * cout].add(w[:, :, kk])
    return t, lout


def _tiled_bias(b, lout):
    return jnp.tile(jnp.asarray(b, jnp.float32).reshape(1, -1), (1, lout))


def _build_weight_slab(named_mats):
    """Pack 2-D matrices into one (rows, sum of 128-padded widths) slab.

    Each matrix is zero-padded to `rows` rows and placed at a 128-aligned lane
    offset, so the kernel can slice it with a static lane slice and feed the
    full slab height to the MXU (zero rows contribute nothing).
    """
    rows = _round_up(max(m.shape[0] for _, m in named_mats), 8)
    cols, offs, off = [], {}, 0
    for name, m in named_mats:
        r, c = m.shape
        blk = _round_up(c, _LANE)
        padded = jnp.zeros((rows, blk), jnp.float32).at[:r, :c].set(
            m.astype(jnp.float32))
        cols.append(padded)
        offs[name] = (off, c)
        off += blk
    return jnp.concatenate(cols, axis=1), offs, rows


def _build_row_slab(named_vecs):
    """Pack 1-row vectors (biases / BN params) into one (1, K*128) slab."""
    cols, offs, off = [], {}, 0
    for name, v in named_vecs:
        v = jnp.asarray(v, jnp.float32).reshape(1, -1)
        c = v.shape[1]
        blk = _round_up(c, _LANE)
        padded = jnp.zeros((1, blk), jnp.float32).at[:, :c].set(v)
        cols.append(padded)
        offs[name] = (off, c)
        off += blk
    return jnp.concatenate(cols, axis=1), offs


# ----------------------------- in-kernel helpers ---------------------------- #

def _bn_tanh(h, gamma, beta, c, nblk):
    """Training-mode BatchNorm1d (batch stats, biased var, eps=1e-5) + Tanh.

    `h` is an (N, nblk*C) slab, l-major / c-minor.  Per-channel stats over
    (N, nblk) are built from static lane slices (no MXU dots).
    """
    n = h.shape[0]
    inv = 1.0 / float(n * nblk)
    blocks = [h[:, i * c:(i + 1) * c] for i in range(nblk)]
    mean = sum(jnp.sum(b, axis=0, keepdims=True) for b in blocks) * inv
    diffs = [b - mean for b in blocks]
    var = sum(jnp.sum(d * d, axis=0, keepdims=True) for d in diffs) * inv
    s = gamma * jax.lax.rsqrt(var + _BN_EPS)
    if nblk == 1:
        return jnp.tanh(diffs[0] * s + beta)
    return jnp.concatenate([jnp.tanh(d * s + beta) for d in diffs], axis=1)


def _make_vae_kernel(st):
    """Build the fused VAE kernel with all layout constants closed over (static)."""
    w_offs, v_offs = st["w_offs"], st["v_offs"]
    slab_rows = st["slab_rows"]
    x_w, latent = st["x_w"], st["latent"]
    c1, l1, c2 = st["c1"], st["l1"], st["c2"]
    cd, ld = st["cd"], st["ld"]
    cls_w, dec_w = st["cls_w"], st["dec_w"]
    cls_pad, recon_w, out_w = st["cls_pad"], st["recon_w"], st["out_w"]

    def kernel(acts_ref, w_ref, v_ref, out_ref):
        f32 = jnp.float32
        acts = acts_ref[...]                    # (N, slab_rows) = [x | eps | 0]
        n = acts.shape[0]

        def V(name):
            o, c = v_offs[name]
            return v_ref[:, o:o + c]

        def matw(lhs, wname, bname):
            o, c = w_offs[wname]
            k = lhs.shape[1]
            if k < slab_rows:                   # zero-lane pad (zero rows in slab)
                lhs = jnp.concatenate(
                    [lhs, jnp.zeros((lhs.shape[0], slab_rows - k), f32)], axis=1)
            return jnp.dot(lhs, w_ref[:, o:o + c],
                           preferred_element_type=f32) + V(bname)

        # ---- Encoder (Conv1d -> BN -> Tanh -> Dropout(p=0)) x2 ------------- #
        h = matw(acts, "t1", "b1")
        h = _bn_tanh(h, V("g1"), V("be1"), c1, l1)
        h = matw(h, "t2", "b2")
        h = _bn_tanh(h, V("g2"), V("be2"), c2, 1)       # final length == 1

        # ---- fc_mu | fc_logvar (one fused matmul) --------------------------- #
        muv = matw(h, "wmv", "bmv")
        mu = muv[:, :latent]
        logvar = muv[:, latent:2 * latent]

        # ---- Reparameterize: z = mu + eps * exp(0.5 * logvar) --------------- #
        eps = acts[:, x_w:x_w + latent]
        z = mu + eps * jnp.exp(0.5 * logvar)

        # ---- classifier layer 1 | decoder (fc ⊕ ConvT): one fused matmul ---- #
        zc = matw(z, "wzc", "bzc")
        cls = jnp.maximum(zc[:, :cls_w], 0.0)
        d = zc[:, cls_w:cls_w + dec_w]

        # ---- classifier layer 2 + Sigmoid (output padded to cls_pad lanes) -- #
        bin_out = jax.nn.sigmoid(matw(cls, "wc2", "bc2"))

        # ---- decoder BN + Tanh, then final ConvTranspose1d ------------------ #
        d = _bn_tanh(d, V("gd"), V("bed"), cd, ld)
        recon = matw(d, "tf", "bf")

        # ---- single lane-dense packed output -------------------------------- #
        pad_w = out_w - (cls_pad + recon_w + 2 * latent)
        pieces = [bin_out, recon, mu, logvar]
        if pad_w > 0:
            pieces.append(jnp.zeros((n, pad_w), f32))
        out_ref[...] = jnp.concatenate(pieces, axis=1)

    return kernel


# ------------------------------- param packing ------------------------------ #

def prepare_params(raw, *, strides, paddings, latent_dim, seq_len,
                   seq_cls_len, cls_pad):
    """PyTorch-layout params -> 2 consolidated VMEM slabs + static layout info."""
    # Encoder block 1
    w1, b1, g1, be1 = raw["enc_convs"][0]
    cin, c1 = w1.shape[1], w1.shape[0]
    t1, l1 = _conv1d_dense(w1, seq_len, strides[0], paddings[0])
    # Encoder block 2
    w2, b2, g2, be2 = raw["enc_convs"][1]
    c2 = w2.shape[0]
    t2, l2 = _conv1d_dense(w2, l1, strides[1], paddings[1])
    assert l2 == 1, "encoder must reduce sequence length to 1 (x.view(B,-1) feeds fc_mu)"

    # fc_mu | fc_logvar fused into one matmul
    wmv = jnp.concatenate([raw["fc_mu_w"], raw["fc_lv_w"]], axis=1)
    bmv = jnp.concatenate([raw["fc_mu_b"], raw["fc_lv_b"]]).reshape(1, -1)

    # Decoder: fuse fc with the first ConvTranspose (no nonlinearity between them)
    st_r, pd_r = strides[::-1], paddings[::-1]
    wd, bd, gd, bed = raw["dec_convs"][0]
    cd = wd.shape[1]
    td, ld = _convt1d_dense(wd, 1, st_r[0], pd_r[0])
    wdec = jnp.dot(raw["dec_fc_w"], td)                                  # (latent, ld*cd)
    bdec = jnp.dot(raw["dec_fc_b"].reshape(1, -1), td) + _tiled_bias(bd, ld)

    # Classifier layer 1 fused lane-wise with the decoder fused matmul
    cls_w = raw["bc1_w"].shape[1]
    dec_w = wdec.shape[1]
    wzc = jnp.concatenate([raw["bc1_w"], wdec], axis=1)                  # (latent, cls_w+dec_w)
    bzc = jnp.concatenate([raw["bc1_b"].reshape(1, -1), bdec], axis=1)

    # Classifier layer 2, padded 200 -> cls_pad lanes (sliced back outside)
    pad = cls_pad - seq_cls_len
    wc2 = jnp.pad(raw["bc2_w"], ((0, 0), (0, pad)))
    bc2 = jnp.pad(raw["bc2_b"], ((0, pad),)).reshape(1, -1)

    # Final ConvTranspose1d(cd, 1, kernel_size=3, stride=1, padding=1)
    tf, lf = _convt1d_dense(raw["final_w"], ld, 1, 1)
    bf = _tiled_bias(raw["final_b"], lf)
    out_channels = raw["final_w"].shape[1]
    recon_w = lf * out_channels

    wslab, w_offs, slab_rows = _build_weight_slab([
        ("t1", t1), ("t2", t2), ("wmv", wmv),
        ("wzc", wzc), ("wc2", wc2), ("tf", tf)])
    vslab, v_offs = _build_row_slab([
        ("b1", _tiled_bias(b1, l1)), ("g1", g1), ("be1", be1),
        ("b2", _tiled_bias(b2, l2)), ("g2", g2), ("be2", be2),
        ("bmv", bmv), ("bzc", bzc), ("bc2", bc2),
        ("gd", gd), ("bed", bed), ("bf", bf)])

    x_w = seq_len * cin
    assert x_w + latent_dim <= slab_rows, "acts slab too narrow for [x | eps]"
    out_w = _round_up(cls_pad + recon_w + 2 * latent_dim, _LANE)

    static = dict(w_offs=w_offs, v_offs=v_offs, slab_rows=slab_rows, x_w=x_w,
                  latent=latent_dim, c1=c1, l1=l1, c2=c2, cd=cd, ld=ld,
                  cls_w=cls_w, dec_w=dec_w, cls_pad=cls_pad, recon_w=recon_w,
                  out_w=out_w, lf=lf, out_channels=out_channels,
                  seq_cls_len=seq_cls_len)
    params = {"wslab": wslab, "vslab": vslab}
    return params, static


# ------------------------------- model forward ------------------------------ #

def vae_forward(params, x, eps, *, kernel, static):
    n, cin, l = x.shape
    # (N, Cin, L) -> (N, L*Cin) slab (l-major / c-minor), packed with eps.
    x_flat = jnp.transpose(x, (0, 2, 1)).reshape(n, l * cin)
    pad_w = static["slab_rows"] - (static["x_w"] + static["latent"])
    pieces = [x_flat, eps]
    if pad_w > 0:
        pieces.append(jnp.zeros((n, pad_w), jnp.float32))
    acts = jnp.concatenate(pieces, axis=1)

    out = pl.pallas_call(
        kernel,
        out_shape=jax.ShapeDtypeStruct((n, static["out_w"]), jnp.float32),
        in_specs=[VMEM_SPEC, VMEM_SPEC, VMEM_SPEC],
        out_specs=VMEM_SPEC,
        compiler_params=pltpu.CompilerParams(vmem_limit_bytes=32 * 1024 * 1024),
    )(acts, params["wslab"], params["vslab"])

    # Unpack the single lane-dense output slab.
    cp, rw, lat = static["cls_pad"], static["recon_w"], static["latent"]
    binary_pred = out[:, :static["seq_cls_len"]]
    recon_flat = out[:, cp:cp + rw]
    mu = out[:, cp + rw:cp + rw + lat]
    logvar = out[:, cp + rw + lat:cp + rw + 2 * lat]
    recon_x = jnp.transpose(
        recon_flat.reshape(n, static["lf"], static["out_channels"]), (0, 2, 1))
    return recon_x, binary_pred, mu, logvar


# -------------------------------- param setup -------------------------------- #

def make_raw_params(key, *, input_channels, enc_channels, dec_channels,
                    kernel_sizes, latent_dim, seq_cls_len):
    keys = iter(jax.random.split(key, 32))

    def w(shape, scale=0.1):
        return (scale * jax.random.normal(next(keys), shape)).astype(jnp.float32)

    raw = {}
    enc_in = [input_channels] + list(enc_channels[:-1])
    raw["enc_convs"] = [
        (w((cout, cin, k)), w((cout,)), w((cout,)) + 1.0, w((cout,)))   # conv w/b, BN gamma/beta
        for cin, cout, k in zip(enc_in, enc_channels, kernel_sizes)
    ]
    c_last = enc_channels[-1]
    raw["fc_mu_w"], raw["fc_mu_b"] = w((c_last, latent_dim)), w((latent_dim,))
    raw["fc_lv_w"], raw["fc_lv_b"] = w((c_last, latent_dim)), w((latent_dim,))
    raw["bc1_w"], raw["bc1_b"] = w((latent_dim, 2 * latent_dim)), w((2 * latent_dim,))
    raw["bc2_w"], raw["bc2_b"] = w((2 * latent_dim, seq_cls_len)), w((seq_cls_len,))
    raw["dec_fc_w"], raw["dec_fc_b"] = w((latent_dim, dec_channels[0])), w((dec_channels[0],))
    raw["dec_convs"] = [
        (w((cin, cout, k)), w((cout,)), w((cout,)) + 1.0, w((cout,)))
        for cin, cout, k in zip(dec_channels[:-1], dec_channels[1:], kernel_sizes[::-1])
    ]
    raw["final_w"], raw["final_b"] = w((dec_channels[-1], 1, 3)), w((1,))
    return raw


# ----------------------------------- main ------------------------------------ #

if __name__ == "__main__":
    # Hyperparameters chosen so the encoder reduces the sequence length to 1
    # (required by `x.view(x.size(0), -1)` feeding fc_mu / fc_logvar).
    hparams = dict(
        input_channels=1,
        encoder_channels=[8, 16],
        decoder_channels=[16, 8],
        kernel_sizes=[4, 4],
        strides=[2, 2],
        paddings=[1, 1],
        dropout=0.0,        # p=0 -> Dropout is exactly identity
        latent_dim=8,
    )
    seq_cls_len = 200       # hardcoded `sequence_length` in the binary classifier
    cls_pad = 256           # lane-dense internal width (sliced back to 200 outside)
    batch, seq_len = 2, 4   # NOTE: throughput is nearly flat up to N=8+ per call
                            # (BN batch stats forbid zero-padding the batch).

    key = jax.random.PRNGKey(0)
    kp, kx, ke = jax.random.split(key, 3)

    raw = make_raw_params(
        kp,
        input_channels=hparams["input_channels"],
        enc_channels=hparams["encoder_channels"],
        dec_channels=hparams["decoder_channels"],
        kernel_sizes=hparams["kernel_sizes"],
        latent_dim=hparams["latent_dim"],
        seq_cls_len=seq_cls_len,
    )
    params, static = prepare_params(
        raw,
        strides=hparams["strides"],
        paddings=hparams["paddings"],
        latent_dim=hparams["latent_dim"],
        seq_len=seq_len,
        seq_cls_len=seq_cls_len,
        cls_pad=cls_pad,
    )
    kernel = _make_vae_kernel(static)

    x = jax.random.normal(kx, (batch, hparams["input_channels"], seq_len), jnp.float32)
    # Deterministic stand-in for torch.randn_like(std) inside reparameterize.
    eps = jax.random.normal(ke, (batch, hparams["latent_dim"]), jnp.float32)

    fwd = jax.jit(functools.partial(vae_forward, kernel=kernel, static=static))
    recon_x, binary_pred, mu, logvar = fwd(params, x, eps)
    jax.block_until_ready((recon_x, binary_pred, mu, logvar))

    assert recon_x.shape == (batch, 1, 2)
    assert binary_pred.shape == (batch, seq_cls_len)
    assert mu.shape == (batch, hparams["latent_dim"])
    assert logvar.shape == (batch, hparams["latent_dim"])
    assert bool(jnp.all(jnp.isfinite(recon_x)))
    assert bool(jnp.all(jnp.isfinite(binary_pred)))
    print("KERNEL_OK")
</pallas_src>

<mosaic_0001>
module attributes {stable_mosaic.version = 11 : i64} {
  func.func @kernel(%arg0: memref<2x16xf32, #tpu.memory_space<vmem>>, %arg1: memref<16x896xf32, #tpu.memory_space<vmem>>, %arg2: memref<1x1664xf32, #tpu.memory_space<vmem>>, %arg3: memref<2x384xf32, #tpu.memory_space<vmem>>) attributes {dimension_semantics = [], scalar_prefetch = 0 : i64, scratch_operands = 0 : i64, tpu.core_type = #tpu.core_type<tc>} {
    %c0 = arith.constant 0 : index
    %c0_0 = arith.constant 0 : index
    %0 = vector.load %arg0[%c0, %c0_0] : memref<2x16xf32, #tpu.memory_space<vmem>>, vector<2x16xf32>
    %c0_1 = arith.constant 0 : index
    %c0_2 = arith.constant 0 : index
    %1 = vector.load %arg1[%c0_1, %c0_2] : memref<16x896xf32, #tpu.memory_space<vmem>>, vector<16x16xf32>
    %cst = arith.constant dense<0.000000e+00> : vector<2x16xf32>
    %2 = tpu.matmul %0, %1, %cst {dimension_numbers = #tpu.dot_dimension_numbers<[1], [0], [0], [1], [0, 0, 1, 1], [], []>} : vector<2x16xf32>, vector<16x16xf32>, vector<2x16xf32> -> vector<2x16xf32>
    %c0_3 = arith.constant 0 : index
    %c0_4 = arith.constant 0 : index
    %3 = vector.load %arg2[%c0_3, %c0_4] : memref<1x1664xf32, #tpu.memory_space<vmem>>, vector<1x16xf32>
    %4 = vector.broadcast %3 : vector<1x16xf32> to vector<2x16xf32>
    %5 = arith.addf %2, %4 : vector<2x16xf32>
    %c0_5 = arith.constant 0 : index
    %c128 = arith.constant 128 : index
    %6 = vector.load %arg2[%c0_5, %c128] : memref<1x1664xf32, #tpu.memory_space<vmem>>, vector<1x8xf32>
    %c0_6 = arith.constant 0 : index
    %c256 = arith.constant 256 : index
    %7 = vector.load %arg2[%c0_6, %c256] : memref<1x1664xf32, #tpu.memory_space<vmem>>, vector<1x8xf32>
    %8 = vector.extract_strided_slice %5 {offsets = [0, 0], sizes = [2, 8], strides = [1, 1]} : vector<2x16xf32> to vector<2x8xf32>
    %9 = vector.extract_strided_slice %5 {offsets = [0, 8], sizes = [2, 8], strides = [1, 1]} : vector<2x16xf32> to vector<2x8xf32>
    %cst_7 = arith.constant dense<0.000000e+00> : vector<8xf32>
    %10 = vector.multi_reduction <add>, %8, %cst_7 [0] : vector<2x8xf32> to vector<8xf32>
    %11 = vector.shape_cast %10 : vector<8xf32> to vector<1x8xf32>
    %cst_8 = arith.constant 0.000000e+00 : f32
    %12 = vector.broadcast %cst_8 : f32 to vector<1x8xf32>
    %13 = arith.addf %12, %11 : vector<1x8xf32>
    %cst_9 = arith.constant dense<0.000000e+00> : vector<8xf32>
    %14 = vector.multi_reduction <add>, %9, %cst_9 [0] : vector<2x8xf32> to vector<8xf32>
    %15 = vector.shape_cast %14 : vector<8xf32> to vector<1x8xf32>
    %16 = arith.addf %13, %15 : vector<1x8xf32>
    %cst_10 = arith.constant 2.500000e-01 : f32
    %17 = vector.broadcast %cst_10 : f32 to vector<1x8xf32>
    %18 = arith.mulf %16, %17 : vector<1x8xf32>
    %19 = vector.broadcast %18 : vector<1x8xf32> to vector<2x8xf32>
    %20 = arith.subf %8, %19 : vector<2x8xf32>
    %21 = vector.broadcast %18 : vector<1x8xf32> to vector<2x8xf32>
    %22 = arith.subf %9, %21 : vector<2x8xf32>
    %23 = arith.mulf %20, %20 : vector<2x8xf32>
    %cst_11 = arith.constant dense<0.000000e+00> : vector<8xf32>
    %24 = vector.multi_reduction <add>, %23, %cst_11 [0] : vector<2x8xf32> to vector<8xf32>
    %25 = vector.shape_cast %24 : vector<8xf32> to vector<1x8xf32>
    %cst_12 = arith.constant 0.000000e+00 : f32
    %26 = vector.broadcast %cst_12 : f32 to vector<1x8xf32>
    %27 = arith.addf %26, %25 : vector<1x8xf32>
    %28 = arith.mulf %22, %22 : vector<2x8xf32>
    %cst_13 = arith.constant dense<0.000000e+00> : vector<8xf32>
    %29 = vector.multi_reduction <add>, %28, %cst_13 [0] : vector<2x8xf32> to vector<8xf32>
    %30 = vector.shape_cast %29 : vector<8xf32> to vector<1x8xf32>
    %31 = arith.addf %27, %30 : vector<1x8xf32>
    %cst_14 = arith.constant 2.500000e-01 : f32
    %32 = vector.broadcast %cst_14 : f32 to vector<1x8xf32>
    %33 = arith.mulf %31, %32 : vector<1x8xf32>
    %cst_15 = arith.constant 9.99999974E-6 : f32
    %34 = vector.broadcast %cst_15 : f32 to vector<1x8xf32>
    %35 = arith.addf %33, %34 : vector<1x8xf32>
    %36 = math.rsqrt %35 : vector<1x8xf32>
    %37 = arith.mulf %6, %36 : vector<1x8xf32>
    %38 = vector.broadcast %37 : vector<1x8xf32> to vector<2x8xf32>
    %39 = arith.mulf %20, %38 : vector<2x8xf32>
    %40 = vector.broadcast %7 : vector<1x8xf32> to vector<2x8xf32>
    %41 = arith.addf %39, %40 : vector<2x8xf32>
    %42 = math.tanh %41 : vector<2x8xf32>
    %43 = vector.broadcast %37 : vector<1x8xf32> to vector<2x8xf32>
    %44 = arith.mulf %22, %43 : vector<2x8xf32>
    %45 = vector.broadcast %7 : vector<1x8xf32> to vector<2x8xf32>
    %46 = arith.addf %44, %45 : vector<2x8xf32>
    %47 = math.tanh %46 : vector<2x8xf32>
    %48 = tpu.concatenate %42, %47 in 1 : vector<2x8xf32>, vector<2x8xf32> -> vector<2x16xf32>
    %c0_16 = arith.constant 0 : index
    %c128_17 = arith.constant 128 : index
    %49 = vector.load %arg1[%c0_16, %c128_17] : memref<16x896xf32, #tpu.memory_space<vmem>>, vector<16x16xf32>
    %cst_18 = arith.constant dense<0.000000e+00> : vector<2x16xf32>
    %50 = tpu.matmul %48, %49, %cst_18 {dimension_numbers = #tpu.dot_dimension_numbers<[1], [0], [0], [1], [0, 0, 1, 1], [], []>} : vector<2x16xf32>, vector<16x16xf32>, vector<2x16xf32> -> vector<2x16xf32>
    %c0_19 = arith.constant 0 : index
    %c384 = arith.constant 384 : index
    %51 = vector.load %arg2[%c0_19, %c384] : memref<1x1664xf32, #tpu.memory_space<vmem>>, vector<1x16xf32>
    %52 = vector.broadcast %51 : vector<1x16xf32> to vector<2x16xf32>
    %53 = arith.addf %50, %52 : vector<2x16xf32>
    %c0_20 = arith.constant 0 : index
    %c512 = arith.constant 512 : index
    %54 = vector.load %arg2[%c0_20, %c512] : memref<1x1664xf32, #tpu.memory_space<vmem>>, vector<1x16xf32>
    %c0_21 = arith.constant 0 : index
    %c640 = arith.constant 640 : index
    %55 = vector.load %arg2[%c0_21, %c640] : memref<1x1664xf32, #tpu.memory_space<vmem>>, vector<1x16xf32>
    %cst_22 = arith.constant dense<0.000000e+00> : vector<16xf32>
    %56 = vector.multi_reduction <add>, %53, %cst_22 [0] : vector<2x16xf32> to vector<16xf32>
    %57 = vector.shape_cast %56 : vector<16xf32> to vector<1x16xf32>
    %cst_23 = arith.constant 0.000000e+00 : f32
    %58 = vector.broadcast %cst_23 : f32 to vector<1x16xf32>
    %59 = arith.addf %58, %57 : vector<1x16xf32>
    %cst_24 = arith.constant 5.000000e-01 : f32
    %60 = vector.broadcast %cst_24 : f32 to vector<1x16xf32>
    %61 = arith.mulf %59, %60 : vector<1x16xf32>
    %62 = vector.broadcast %61 : vector<1x16xf32> to vector<2x16xf32>
    %63 = arith.subf %53, %62 : vector<2x16xf32>
    %64 = arith.mulf %63, %63 : vector<2x16xf32>
    %cst_25 = arith.constant dense<0.000000e+00> : vector<16xf32>
    %65 = vector.multi_reduction <add>, %64, %cst_25 [0] : vector<2x16xf32> to vector<16xf32>
    %66 = vector.shape_cast %65 : vector<16xf32> to vector<1x16xf32>
    %cst_26 = arith.constant 0.000000e+00 : f32
    %67 = vector.broadcast %cst_26 : f32 to vector<1x16xf32>
    %68 = arith.addf %67, %66 : vector<1x16xf32>
    %cst_27 = arith.constant 5.000000e-01 : f32
    %69 = vector.broadcast %cst_27 : f32 to vector<1x16xf32>
    %70 = arith.mulf %68, %69 : vector<1x16xf32>
    %cst_28 = arith.constant 9.99999974E-6 : f32
    %71 = vector.broadcast %cst_28 : f32 to vector<1x16xf32>
    %72 = arith.addf %70, %71 : vector<1x16xf32>
    %73 = math.rsqrt %72 : vector<1x16xf32>
    %74 = arith.mulf %54, %73 : vector<1x16xf32>
    %75 = vector.broadcast %74 : vector<1x16xf32> to vector<2x16xf32>
    %76 = arith.mulf %63, %75 : vector<2x16xf32>
    %77 = vector.broadcast %55 : vector<1x16xf32> to vector<2x16xf32>
    %78 = arith.addf %76, %77 : vector<2x16xf32>
    %79 = math.tanh %78 : vector<2x16xf32>
    %c0_29 = arith.constant 0 : index
    %c256_30 = arith.constant 256 : index
    %80 = vector.load %arg1[%c0_29, %c256_30] : memref<16x896xf32, #tpu.memory_space<vmem>>, vector<16x16xf32>
    %cst_31 = arith.constant dense<0.000000e+00> : vector<2x16xf32>
    %81 = tpu.matmul %79, %80, %cst_31 {dimension_numbers = #tpu.dot_dimension_numbers<[1], [0], [0], [1], [0, 0, 1, 1], [], []>} : vector<2x16xf32>, vector<16x16xf32>, vector<2x16xf32> -> vector<2x16xf32>
    %c0_32 = arith.constant 0 : index
    %c768 = arith.constant 768 : index
    %82 = vector.load %arg2[%c0_32, %c768] : memref<1x1664xf32, #tpu.memory_space<vmem>>, vector<1x16xf32>
    %83 = vector.broadcast %82 : vector<1x16xf32> to vector<2x16xf32>
    %84 = arith.addf %81, %83 : vector<2x16xf32>
    %85 = vector.extract_strided_slice %84 {offsets = [0, 0], sizes = [2, 8], strides = [1, 1]} : vector<2x16xf32> to vector<2x8xf32>
    %86 = vector.extract_strided_slice %84 {offsets = [0, 8], sizes = [2, 8], strides = [1, 1]} : vector<2x16xf32> to vector<2x8xf32>
    %87 = vector.extract_strided_slice %0 {offsets = [0, 4], sizes = [2, 8], strides = [1, 1]} : vector<2x16xf32> to vector<2x8xf32>
    %cst_33 = arith.constant 5.000000e-01 : f32
    %88 = vector.broadcast %cst_33 : f32 to vector<2x8xf32>
    %89 = arith.mulf %88, %86 : vector<2x8xf32>
    %90 = math.exp %89 : vector<2x8xf32>
    %91 = arith.mulf %87, %90 : vector<2x8xf32>
    %92 = arith.addf %85, %91 : vector<2x8xf32>
    %cst_34 = arith.constant 0.000000e+00 : f32
    %93 = vector.broadcast %cst_34 : f32 to vector<2x8xf32>
    %94 = tpu.concatenate %92, %93 in 1 : vector<2x8xf32>, vector<2x8xf32> -> vector<2x16xf32>
    %c0_35 = arith.constant 0 : index
    %c384_36 = arith.constant 384 : index
    %95 = vector.load %arg1[%c0_35, %c384_36] : memref<16x896xf32, #tpu.memory_space<vmem>>, vector<16x32xf32>
    %cst_37 = arith.constant dense<0.000000e+00> : vector<2x32xf32>
    %96 = tpu.matmul %94, %95, %cst_37 {dimension_numbers = #tpu.dot_dimension_numbers<[1], [0], [0], [1], [0, 0, 1, 1], [], []>} : vector<2x16xf32>, vector<16x32xf32>, vector<2x32xf32> -> vector<2x32xf32>
    %c0_38 = arith.constant 0 : index
    %c896 = arith.constant 896 : index
    %97 = vector.load %arg2[%c0_38, %c896] : memref<1x1664xf32, #tpu.memory_space<vmem>>, vector<1x32xf32>
    %98 = vector.broadcast %97 : vector<1x32xf32> to vector<2x32xf32>
    %99 = arith.addf %96, %98 : vector<2x32xf32>
    %100 = vector.extract_strided_slice %99 {offsets = [0, 0], sizes = [2, 16], strides = [1, 1]} : vector<2x32xf32> to vector<2x16xf32>
    %cst_39 = arith.constant 0.000000e+00 : f32
    %101 = vector.broadcast %cst_39 : f32 to vector<2x16xf32>
    %102 = arith.maximumf %100, %101 : vector<2x16xf32>
    %103 = vector.extract_strided_slice %99 {offsets = [0, 16], sizes = [2, 16], strides = [1, 1]} : vector<2x32xf32> to vector<2x16xf32>
    %c0_40 = arith.constant 0 : index
    %c512_41 = arith.constant 512 : index
    %104 = vector.load %arg1[%c0_40, %c512_41] : memref<16x896xf32, #tpu.memory_space<vmem>>, vector<16x256xf32>
    %cst_42 = arith.constant dense<0.000000e+00> : vector<2x256xf32>
    %105 = tpu.matmul %102, %104, %cst_42 {dimension_numbers = #tpu.dot_dimension_numbers<[1], [0], [0], [1], [0, 0, 1, 1], [], []>} : vector<2x16xf32>, vector<16x256xf32>, vector<2x256xf32> -> vector<2x256xf32>
    %c0_43 = arith.constant 0 : index
    %c1024 = arith.constant 1024 : index
    %106 = vector.load %arg2[%c0_43, %c1024] : memref<1x1664xf32, #tpu.memory_space<vmem>>, vector<1x256xf32>
    %107 = vector.broadcast %106 : vector<1x256xf32> to vector<2x256xf32>
    %108 = arith.addf %105, %107 : vector<2x256xf32>
    %109 = arith.negf %108 : vector<2x256xf32>
    %110 = math.exp %109 : vector<2x256xf32>
    %cst_44 = arith.constant 1.000000e+00 : f32
    %111 = vector.broadcast %cst_44 : f32 to vector<2x256xf32>
    %112 = arith.addf %111, %110 : vector<2x256xf32>
    %113 = arith.divf %111, %112 : vector<2x256xf32>
    %c0_45 = arith.constant 0 : index
    %c1280 = arith.constant 1280 : index
    %114 = vector.load %arg2[%c0_45, %c1280] : memref<1x1664xf32, #tpu.memory_space<vmem>>, vector<1x8xf32>
    %c0_46 = arith.constant 0 : index
    %c1408 = arith.constant 1408 : index
    %115 = vector.load %arg2[%c0_46, %c1408] : memref<1x1664xf32, #tpu.memory_space<vmem>>, vector<1x8xf32>
    %116 = vector.extract_strided_slice %103 {offsets = [0, 0], sizes = [2, 8], strides = [1, 1]} : vector<2x16xf32> to vector<2x8xf32>
    %117 = vector.extract_strided_slice %103 {offsets = [0, 8], sizes = [2, 8], strides = [1, 1]} : vector<2x16xf32> to vector<2x8xf32>
    %cst_47 = arith.constant dense<0.000000e+00> : vector<8xf32>
    %118 = vector.multi_reduction <add>, %116, %cst_47 [0] : vector<2x8xf32> to vector<8xf32>
    %119 = vector.shape_cast %118 : vector<8xf32> to vector<1x8xf32>
    %cst_48 = arith.constant 0.000000e+00 : f32
    %120 = vector.broadcast %cst_48 : f32 to vector<1x8xf32>
    %121 = arith.addf %120, %119 : vector<1x8xf32>
    %cst_49 = arith.constant dense<0.000000e+00> : vector<8xf32>
    %122 = vector.multi_reduction <add>, %117, %cst_49 [0] : vector<2x8xf32> to vector<8xf32>
    %123 = vector.shape_cast %122 : vector<8xf32> to vector<1x8xf32>
    %124 = arith.addf %121, %123 : vector<1x8xf32>
    %cst_50 = arith.constant 2.500000e-01 : f32
    %125 = vector.broadcast %cst_50 : f32 to vector<1x8xf32>
    %126 = arith.mulf %124, %125 : vector<1x8xf32>
    %127 = vector.broadcast %126 : vector<1x8xf32> to vector<2x8xf32>
    %128 = arith.subf %116, %127 : vector<2x8xf32>
    %129 = vector.broadcast %126 : vector<1x8xf32> to vector<2x8xf32>
    %130 = arith.subf %117, %129 : vector<2x8xf32>
    %131 = arith.mulf %128, %128 : vector<2x8xf32>
    %cst_51 = arith.constant dense<0.000000e+00> : vector<8xf32>
    %132 = vector.multi_reduction <add>, %131, %cst_51 [0] : vector<2x8xf32> to vector<8xf32>
    %133 = vector.shape_cast %132 : vector<8xf32> to vector<1x8xf32>
    %cst_52 = arith.constant 0.000000e+00 : f32
    %134 = vector.broadcast %cst_52 : f32 to vector<1x8xf32>
    %135 = arith.addf %134, %133 : vector<1x8xf32>
    %136 = arith.mulf %130, %130 : vector<2x8xf32>
    %cst_53 = arith.constant dense<0.000000e+00> : vector<8xf32>
    %137 = vector.multi_reduction <add>, %136, %cst_53 [0] : vector<2x8xf32> to vector<8xf32>
    %138 = vector.shape_cast %137 : vector<8xf32> to vector<1x8xf32>
    %139 = arith.addf %135, %138 : vector<1x8xf32>
    %cst_54 = arith.constant 2.500000e-01 : f32
    %140 = vector.broadcast %cst_54 : f32 to vector<1x8xf32>
    %141 = arith.mulf %139, %140 : vector<1x8xf32>
    %cst_55 = arith.constant 9.99999974E-6 : f32
    %142 = vector.broadcast %cst_55 : f32 to vector<1x8xf32>
    %143 = arith.addf %141, %142 : vector<1x8xf32>
    %144 = math.rsqrt %143 : vector<1x8xf32>
    %145 = arith.mulf %114, %144 : vector<1x8xf32>
    %146 = vector.broadcast %145 : vector<1x8xf32> to vector<2x8xf32>
    %147 = arith.mulf %128, %146 : vector<2x8xf32>
    %148 = vector.broadcast %115 : vector<1x8xf32> to vector<2x8xf32>
    %149 = arith.addf %147, %148 : vector<2x8xf32>
    %150 = math.tanh %149 : vector<2x8xf32>
    %151 = vector.broadcast %145 : vector<1x8xf32> to vector<2x8xf32>
    %152 = arith.mulf %130, %151 : vector<2x8xf32>
    %153 = vector.broadcast %115 : vector<1x8xf32> to vector<2x8xf32>
    %154 = arith.addf %152, %153 : vector<2x8xf32>
    %155 = math.tanh %154 : vector<2x8xf32>
    %156 = tpu.concatenate %150, %155 in 1 : vector<2x8xf32>, vector<2x8xf32> -> vector<2x16xf32>
    %c0_56 = arith.constant 0 : index
    %c768_57 = arith.constant 768 : index
    %157 = vector.load %arg1[%c0_56, %c768_57] : memref<16x896xf32, #tpu.memory_space<vmem>>, vector<16x2xf32>
    %cst_58 = arith.constant dense<0.000000e+00> : vector<2x2xf32>
    %158 = tpu.matmul %156, %157, %cst_58 {dimension_numbers = #tpu.dot_dimension_numbers<[1], [0], [0], [1], [0, 0, 1, 1], [], []>} : vector<2x16xf32>, vector<16x2xf32>, vector<2x2xf32> -> vector<2x2xf32>
    %c0_59 = arith.constant 0 : index
    %c1536 = arith.constant 1536 : index
    %159 = vector.load %arg2[%c0_59, %c1536] : memref<1x1664xf32, #tpu.memory_space<vmem>>, vector<1x2xf32>
    %160 = vector.broadcast %159 : vector<1x2xf32> to vector<2x2xf32>
    %161 = arith.addf %158, %160 : vector<2x2xf32>
    %cst_60 = arith.constant 0.000000e+00 : f32
    %162 = vector.broadcast %cst_60 : f32 to vector<2x110xf32>
    %163 = tpu.concatenate %113, %161, %85, %86, %162 in 1 : vector<2x256xf32>, vector<2x2xf32>, vector<2x8xf32>, vector<2x8xf32>, vector<2x110xf32> -> vector<2x384xf32>
    %c0_61 = arith.constant 0 : index
    %c0_62 = arith.constant 0 : index
    %164 = vector.load %arg3[%c0_61, %c0_62] : memref<2x384xf32, #tpu.memory_space<vmem>>, vector<2x384xf32>
    tpu.vector_store %arg3[%c0_61, %c0_62], %163 {strides = array<i32>} : memref<2x384xf32, #tpu.memory_space<vmem>>, vector<2x384xf32>,
    return
  }
}

</mosaic_0001>

<bundles_post_ra>
// kernel: vae_forward.1
= control target key start
LH: loop header
LB: loop body
LE: loop exit
PB: predicated region body
PF: predicated region fallthrough
CT: control target
= control target key end

     0   :  { %8 = vsyncpa [#allocation3], 0  ;;  %s987_s12 = smov [#allocation2]   ;;  %s1149_s0 = inlined_call_operand.vmem [shape: f32[2,16], index: 0, kind: input, shape index: {}]   ;;  %s1150_s1 = inlined_call_operand.hbm [shape: f32[16,896], index: 1, kind: input, shape index: {}]   ;;  %s1151_s2 = inlined_call_operand.vmem [shape: f32[1,1664], index: 2, kind: input, shape index: {}]   ;;  %s1152_s3 = inlined_call_operand.vmem [shape: f32[2,384], index: 3, kind: output, shape index: {}]  }
   0x1   :  { %s16_s13 = sshll.u32 %s987_s12, 4  ;;  %s963_s16 = scalar_lea.hbm %s1150_s1, 1792  ;;  %s17_s13 = int_to_ptr.vmem [resolvable:$true] %s16_s13 }
   0x2   :  { %p964_p0 = scmp.ne.s32.totalorder %s1150_s1, %s963_s16  ;;  %p967_p1 = scmp.lt.u32.totalorder %s963_s16, %s1150_s1 }
   0x4   :  { %p969_p2 = pnand %p967_p1, %p964_p0 }
   0x6   :  { %972 = shalt.err (!%p969_p2)
}
   0x7   :  { %s973_s21 = scalar_lea.vmem %s17_s13, 1792  ;;  %p978_p4 = scmp.lt.s32.totalorder %s17_s13, %s17_s13 }
   0x8   :  { %p974_p3 = scmp.ne.s32.totalorder %s17_s13, %s973_s21  ;;  %p979_p5 = scmp.lt.s32.totalorder %s973_s21, %s973_s21 }
   0xa   :  { %p980_p6 = por %p979_p5, %p978_p4 }
   0xc   :  { %p981_p7 = pnand %p980_p6, %p974_p3 }
   0xe   :  { %984 = shalt.err (!%p981_p7)
}
   0xf   :  { %s988_s22 = smov 896   ;;  %s989_s23 = smov 56  }
  0x10   :  { %22 = dma.hbm_to_vmem [thread:$0]  %s1150_s1, 1792, %s17_s13, [#allocation3], %s988_s22, %s988_s22, %s989_s23  }
  0x11   :  { %985 = dma.done.wait [#allocation3], 1792  }
  0x12   :  { %986 = vsyncadd [#allocation3], 4294965504  ;;  %v990_v0 = vmov 0.0|0.0   ;;  %vm991_vm0 = vmmov 0   ;;  %v992_v1 = vmov 0.0   ;;  %v29_v2 = vld [vmem:[#allocation2] sm:$0xff]  ;;  %v137_v22 = vlaneseq }
  0x13   :  { %903 = vmatprep.subr.bf16.mxu0 %v990_v0  ;;  %872 = vmatprep.mubr.msk.f32.mxu0 %vm991_vm0, %v992_v1  ;;  %v30_v3 = vld [vmem:[#allocation2 + $0x38] sm:$0xff]  ;;  %v1043_v5 = vld [vmem:[%s1149_s0] sm:$0x3]  ;;  %vm38_vm1 = vcmask 130048   ;;  %vm123_vm2 = vcmask 123968   ;;  %s993_s0 = smov 120  }
  0x14   :  { %906 = vmatprep.subr.bf16.mxu1 %v990_v0  ;;  %879 = vmatprep.mubr.msk.f32.mxu1 %vm991_vm0, %v992_v1  ;;  %v904_v4 = vpack.c.bf16 %v30_v3, %v29_v2  ;;  %v837_v6 = vld [vmem:[%s1151_s2] ss:$0 sm:$0xff]  ;;  %vm114_vm3 = vcmask 58368   ;;  %v1056_v24 = vshrl.u32 %v137_v22, 7  ;;  %s994_s29 = smov 8   ;;  %v199_v55 = vld [vmem:[#allocation2 + $0x8] sm:$0xff] }
  0x15   :  { %v839_v41 = vld [vmem:[%s1151_s2 + $0x2] ss:$0 sm:$0xff]  ;;  %v112_v58 = vld [vmem:[%s1151_s2 + $0x1] sm:$0x1]  ;;  %vm197_vm4 = vcmask 64512   ;;  %vm283_vm5 = vcmask 123904  }
  0x16   :  { %905 = vmatpush3.bf16.msra.mxu0 %v904_v4  ;;  %v1059_v27 = vsub.s32 0, %v1056_v24  ;;  %v200_v56 = vld [vmem:[#allocation2 + $0x40] sm:$0xff]  ;;  %s995_s15 = smov 124   ;;  %vm614_vm6 = vcmask 255168   ;;  %vm605_vm7 = vcmask 189568   ;;  %s997_s20 = smov 112  }
  0x17   :  { %909 = vmatprep.subr.bf16.mxu0 %v990_v0  ;;  %v907_v57 = vpack.c.bf16 %v200_v56, %v199_v55  ;;  %s998_s23 = smov 24   ;;  %s999_s24 = smov 16   ;;  %vm805_vm8 = vcmask 15360   ;;  %vm807_vm9 = vcmask 80896   ;;  %vm809_vm10 = vcmask 146432  }
  0x18   :  { %s1000_s26 = smov 2  }
  0x19   :  { %873 = vmatmul.mubr.msk.f32.vlgmr.msra.gmra.mrb[0].mxu0 %vm38_vm1, %v1043_v5  ;;  %908 = vmatpush3.bf16.msra.mxu1 %v907_v57 }
  0x1a   :  { %886 = vmatprep.mubr.msk.f32.mxu0 %vm991_vm0, %v992_v1  ;;  %912 = vmatprep.subr.bf16.mxu1 %v990_v0 }
  0xec   :  { %v108_v7 = vpop.f32.mrb[0].mxu0 }
  0xed   :  { %v109_v8 = vadd.f32 %v837_v6, %v108_v7  ;;  %v874_v9 = vpop.f32.mrb[1].mxu0 }
  0xef   :  { %v124_v10 = vsel %vm123_vm2, %v109_v8, 0.0  ;;  %v115_v17 = vsel %vm114_vm3, %v109_v8, 0.0 }
  0xf0   :  { %v125_v11 = vrot.slane %v124_v10, 4  ;;  %v116_v18 = vrot.slane %v115_v17, 4 }
  0xf2   :  { %v126_v12 = vadd.f32 %v125_v11, %v124_v10  ;;  %v117_v19 = vadd.f32 %v116_v18, %v115_v17  ;;  %v322_v10 = vld [vmem:[#allocation2 + $0x10] sm:$0xff]  ;;  %v323_v11 = vld [vmem:[#allocation2 + $0x48] sm:$0xff] }
  0xf4   :  { %v127_v13 = vrot.slane %v126_v12, 2  ;;  %v118_v20 = vrot.slane %v117_v19, 2 }
  0xf6   :  { %v128_v14 = vadd.f32 %v127_v13, %v126_v12  ;;  %v119_v21 = vadd.f32 %v118_v20, %v117_v19  ;;  %v910_v12 = vpack.c.bf16 %v323_v11, %v322_v10  ;;  %v840_v13 = vld [vmem:[%s1151_s2 + $0x3] ss:$0 sm:$0xff] }
  0xf8   :  { %v129_v15 = vrot.slane %v128_v14, 1  ;;  %v120_v23 = vrot.slane %v119_v21, 1  ;;  %911 = vmatpush3.bf16.msra.mxu0 %v910_v12 }
  0xfa   :  { %v130_v16 = vadd.f32 %v129_v15, %v128_v14  ;;  %v121_v25 = vadd.f32 %v120_v23, %v119_v21 }
  0xfc   :  { %132 = vrot.lane.b32.xlu0 %v130_v16, %s993_s0 }
 0x16e   :  { %v133_v26 = vpop.permute.xlu0 %132 }
 0x16f   :  { %v135_v28 = vadd.f32 %v133_v26, %v121_v25 }
 0x171   :  { %v136_v29 = vmul.f32 0.25, %v135_v28 }
 0x173   :  { %v140_v30 = vrot.slane %v136_v29, %v1059_v27 }
 0x175   :  { %143 = vrot.lane.b32.xlu0 %v140_v30, %s994_s29  ;;  %v141_v42 = vsub.f32 %v109_v8, %v140_v30 }
 0x177   :  { %v147_v43 = vmul.f32 %v141_v42, %v141_v42 }
 0x179   :  { %192 = vrot.lane.b32.xlu0 %v839_v41, %s994_s29  ;;  %v148_v44 = vsel %vm114_vm3, %v147_v43, 0.0 }
 0x17a   :  { %v149_v45 = vrot.slane %v148_v44, 4 }
 0x17c   :  { %v150_v46 = vadd.f32 %v149_v45, %v148_v44 }
 0x17e   :  { %v151_v47 = vrot.slane %v150_v46, 2 }
 0x180   :  { %v152_v48 = vadd.f32 %v151_v47, %v150_v46  ;;  %v843_v46 = vld [vmem:[%s1151_s2 + $0x6] ss:$0 sm:$0xff] }
 0x182   :  { %v153_v49 = vrot.slane %v152_v48, 1 }
 0x184   :  { %v154_v50 = vadd.f32 %v153_v49, %v152_v48 }
 0x1e7   :  { %v144_v31 = vpop.permute.xlu0 %143 }
 0x1e8   :  { %v146_v32 = vsub.f32 %v109_v8, %v144_v31 }
 0x1ea   :  { %v156_v33 = vmul.f32 %v146_v32, %v146_v32 }
 0x1eb   :  { %v193_v3 = vpop.permute.xlu0 %192 }
 0x1ec   :  { %v157_v34 = vsel %vm123_vm2, %v156_v33, 0.0 }
 0x1ed   :  { %v158_v35 = vrot.slane %v157_v34, 4 }
 0x1ef   :  { %v159_v36 = vadd.f32 %v158_v35, %v157_v34 }
 0x1f1   :  { %v160_v37 = vrot.slane %v159_v36, 2 }
 0x1f3   :  { %v161_v38 = vadd.f32 %v160_v37, %v159_v36 }
 0x1f5   :  { %v162_v39 = vrot.slane %v161_v38, 1 }
 0x1f7   :  { %v163_v40 = vadd.f32 %v162_v39, %v161_v38  ;;  %v281_v38 = vld [vmem:[%s1151_s2 + $0x4] sm:$0x1] }
 0x1f9   :  { %165 = vrot.lane.b32.xlu1 %v163_v40, %s993_s0 }
 0x26b   :  { %v166_v51 = vpop.permute.xlu1 %165 }
 0x26c   :  { %v168_v52 = vadd.f32 %v166_v51, %v154_v50 }
 0x26e   :  { %v169_v53 = vmul.f32 0.25, %v168_v52  ;;  %v418_v52 = vld [vmem:[#allocation2 + $0x18] sm:$0xff] }
 0x270   :  { %v170_v54 = vadd.f32 1e-05, %v169_v53  ;;  %v419_v53 = vld [vmem:[#allocation2 + $0x50] sm:$0xff] }
 0x272   :  { %937 = vrsqrt.f32 %v170_v54  ;;  %v913_v54 = vpack.c.bf16 %v419_v53, %v418_v52 }
 0x27c   :  { %v938_v59 = vpop.eup %937 }
 0x27d   :  { %v172_v60 = vmul.f32 %v938_v59, %v112_v58 }
 0x27f   :  { %v177_v61 = vrot.slane %v172_v60, %v1059_v27 }
 0x281   :  { %188 = vrot.lane.b32.xlu1 %v177_v61, %s994_s29  ;;  %v179_v62 = vmul.f32 %v177_v61, %v141_v42  ;;  %v842_v42 = vld [vmem:[%s1151_s2 + $0x5] ss:$0 sm:$0xff]  ;;  %v502_v61 = vld [vmem:[#allocation2 + $0x28] sm:$0xff] }
 0x283   :  { %v186_v63 = vadd.f32 %v839_v41, %v179_v62  ;;  %v504_v62 = vld [vmem:[#allocation2 + $0x60] sm:$0xff] }
 0x285   :  { %939 = vtanh.f32 %v186_v63  ;;  %v501_v63 = vld [vmem:[#allocation2 + $0x20] sm:$0xff] }
 0x28f   :  { %v940_v7 = vpop.eup %939 }
 0x2f3   :  { %v189_v2 = vpop.permute.xlu1 %188 }
 0x2f4   :  { %v191_v4 = vmul.f32 %v189_v2, %v146_v32  ;;  %v503_v2 = vld [vmem:[#allocation2 + $0x58] sm:$0xff] }
 0x2f6   :  { %v195_v6 = vadd.f32 %v193_v3, %v191_v4  ;;  %v917_v3 = vpack.c.bf16 %v503_v2, %v501_v63 }
 0x2f8   :  { %941 = vtanh.f32 %v195_v6 }
 0x302   :  { %v942_v8 = vpop.eup %941 }
 0x303   :  { %v198_v9 = vsel %vm197_vm4, %v940_v7, %v942_v8 }
 0x304   :  { %880 = vmatmul.mubr.msk.f32.vlgmr.msra.gmra.mrb[0].mxu1 %vm38_vm1, %v198_v9 }
 0x305   :  { %893 = vmatprep.mubr.msk.f32.mxu1 %vm991_vm0, %v992_v1  ;;  %914 = vmatpush3.bf16.msra.mxu1 %v913_v54 }
 0x306   :  { %919 = vmatprep.subr.bf16.mxu1 %v990_v0  ;;  %v915_v0 = vpack.c.bf16 %v504_v62, %v502_v61 }
 0x308   :  { %916 = vmatprep.subr.bf16.mxu0 %v915_v0 }
 0x3d7   :  { %v277_v14 = vpop.f32.mrb[0].mxu1 }
 0x3d8   :  { %v278_v15 = vadd.f32 %v840_v13, %v277_v14  ;;  %v881_v16 = vpop.f32.mrb[1].mxu1 }
 0x3da   :  { %v284_v17 = vsel %vm283_vm5, %v278_v15, 0.0 }
 0x3db   :  { %v285_v18 = vrot.slane %v284_v17, 4 }
 0x3dd   :  { %v286_v19 = vadd.f32 %v285_v18, %v284_v17 }
 0x3df   :  { %v287_v20 = vrot.slane %v286_v19, 2 }
 0x3e1   :  { %v288_v21 = vadd.f32 %v287_v20, %v286_v19 }
 0x3e3   :  { %v289_v22 = vrot.slane %v288_v21, 1 }
 0x3e5   :  { %v290_v23 = vadd.f32 %v289_v22, %v288_v21 }
 0x3e7   :  { %v292_v25 = vmul.f32 0.5, %v290_v23 }
 0x3e9   :  { %v293_v26 = vsub.f32 %v278_v15, %v292_v25 }
 0x3eb   :  { %v294_v28 = vmul.f32 %v293_v26, %v293_v26 }
 0x3ed   :  { %v295_v29 = vsel %vm283_vm5, %v294_v28, 0.0  ;;  %v505_v28 = vld [vmem:[%s1151_s2 + $0x8] sm:$0x3] }
 0x3ee   :  { %v296_v30 = vrot.slane %v295_v29, 4 }
 0x3f0   :  { %v297_v31 = vadd.f32 %v296_v30, %v295_v29  ;;  %v513_v29 = vsub.s32 1, %v1056_v24  ;;  %v510_v30 = vrot.slane %v505_v28, %v1059_v27 }
 0x3f2   :  { %v298_v32 = vrot.slane %v297_v31, 2 }
 0x3f4   :  { %v299_v33 = vadd.f32 %v298_v32, %v297_v31  ;;  %v514_v31 = vrot.slane %v505_v28, %v513_v29 }
 0x3f6   :  { %v300_v34 = vrot.slane %v299_v33, 1 }
 0x3f8   :  { %v301_v35 = vadd.f32 %v300_v34, %v299_v33 }
 0x3fa   :  { %v303_v36 = vmul.f32 0.5, %v301_v35 }
 0x3fc   :  { %v304_v37 = vadd.f32 1e-05, %v303_v36 }
 0x3fe   :  { %943 = vrsqrt.f32 %v304_v37 }
 0x408   :  { %v944_v39 = vpop.eup %943 }
 0x409   :  { %v306_v40 = vmul.f32 %v944_v39, %v281_v38 }
 0x40b   :  { %v311_v41 = vrot.slane %v306_v40, %v1059_v27 }
 0x40d   :  { %v313_v43 = vmul.f32 %v311_v41, %v293_v26 }
 0x40f   :  { %v320_v44 = vadd.f32 %v842_v42, %v313_v43 }
 0x411   :  { %945 = vtanh.f32 %v320_v44 }
 0x41b   :  { %v946_v45 = vpop.eup %945 }
 0x41c   :  { %887 = vmatmul.mubr.msk.f32.vlgmr.msra.gmra.mrb[2].mxu0 %vm38_vm1, %v946_v45 }
 0x41d   :  { %584 = vmatprep.mubr.f32.mxu0 %v992_v1  ;;  %918 = vmatpush1.bf16.msra.mxu0 %v917_v3 }
 0x4ef   :  { %v400_v47 = vpop.f32.mrb[2].mxu0 }
 0x4f0   :  { %v1095_v48 = vadd.f32 %v843_v46, %v400_v47  ;;  %v888_v49 = vpop.f32.mrb[3].mxu0 }
 0x4f2   :  { %v404_v50 = vmul.f32 0.5, %v1095_v48 }
 0x4f4   :  { %v405_v51 = vmul.f32 1.442695, %v404_v50 }
 0x4f6   :  { %947 = vpow2.f32 %v405_v51 }
 0x500   :  { %v948_v55 = vpop.eup %947 }
 0x501   :  { %408 = vrot.lane.b32.xlu1 %v948_v55, %s995_s15 }
 0x573   :  { %v409_v56 = vpop.permute.xlu1 %408 }
 0x574   :  { %v411_v57 = vmul.f32 %v409_v56, %v1043_v5  ;;  %v845_v5 = vld [vmem:[%s1151_s2 + $0x7] ss:$0 sm:$0xff] }
 0x576   :  { %413 = vrot.lane.b32.xlu0 %v411_v57, %s995_s15 }
 0x5e8   :  { %v414_v58 = vpop.permute.xlu0 %413 }
 0x5e9   :  { %v416_v59 = vadd.f32 %v414_v58, %v1095_v48 }
 0x5eb   :  { %v417_v60 = vsel %vm197_vm4, %v416_v59, 0.0 }
 0x5ec   :  { %894 = vmatmul.mubr.msk.f32.vlgmr.msra.gmra.mrb[2].mxu1 %vm38_vm1, %v417_v60 }
 0x5ed   :  { %900 = vmatprep.mubr.msk.f32.mxu1 %vm991_vm0, %v992_v1 }
 0x6bf   :  { %v496_v4 = vpop.f32.mrb[2].mxu1 }
 0x6c0   :  { %v497_v6 = vadd.f32 %v845_v5, %v496_v4  ;;  %v895_v7 = vpop.f32.mrb[3].mxu1 }
 0x6c1   :  { %v996_v7 = vmov 1966171168  }
 0x6c2   :  { %v500_v8 = vmax.f32 %v497_v6, 0.0  ;;  %v615_v9 = vsel %vm614_vm6, %v497_v6, 0.0  ;;  %v606_v15 = vsel %vm605_vm7, %v497_v6, 0.0 }
 0x6c3   :  { %v616_v1 = vrot.slane %v615_v9, 4  ;;  %v607_v16 = vrot.slane %v606_v15, 4 }
 0x6c4   :  { %847 = vmatmul.mubr.msk.f32.vlgmr.msra.gmra.mrb[4].mxu0 %vm38_vm1, %v500_v8  ;;  %v665_v8 = vunpack.c.l.s4 %v996_v7 }
 0x6c5   :  { %v617_v10 = vadd.f32 %v616_v1, %v615_v9  ;;  %v608_v17 = vadd.f32 %v607_v16, %v606_v15  ;;  %v850_v16 = vld [vmem:[%s1151_s2 + $0xb] ss:$0 sm:$0xff] }
 0x6c6   :  { %v666_v9 = vunpack.c.0.s8 %v665_v8 }
 0x6c7   :  { %v618_v11 = vrot.slane %v617_v10, 2  ;;  %v609_v18 = vrot.slane %v608_v17, 2 }
 0x6c8   :  { %v669_v1 = vsub.s32 %v666_v9, %v1056_v24 }
 0x6c9   :  { %v619_v12 = vadd.f32 %v618_v11, %v617_v10  ;;  %v610_v19 = vadd.f32 %v609_v18, %v608_v17  ;;  %v719_v17 = vld [vmem:[#allocation2 + $0x30] sm:$0xff]  ;;  %v720_v18 = vld [vmem:[#allocation2 + $0x68] sm:$0xff] }
 0x6cb   :  { %v620_v13 = vrot.slane %v619_v12, 1  ;;  %v611_v20 = vrot.slane %v610_v19, 1 }
 0x6cd   :  { %v621_v14 = vadd.f32 %v620_v13, %v619_v12  ;;  %v612_v21 = vadd.f32 %v611_v20, %v610_v19  ;;  %v603_v12 = vld [vmem:[%s1151_s2 + $0xa] sm:$0x1]  ;;  %v920_v19 = vpack.c.bf16 %v720_v18, %v719_v17 }
 0x6cf   :  { %623 = vrot.lane.b32.xlu1 %v621_v14, %s993_s0  ;;  %921 = vmatpush3.bf16.msra.mxu1 %v920_v19 }
 0x741   :  { %v624_v22 = vpop.permute.xlu1 %623 }
 0x742   :  { %v626_v23 = vadd.f32 %v624_v22, %v612_v21 }
 0x744   :  { %v627_v25 = vmul.f32 0.25, %v626_v23 }
 0x746   :  { %v631_v26 = vrot.slane %v627_v25, %v1059_v27 }
 0x748   :  { %634 = vrot.lane.b32.xlu0 %v631_v26, %s994_s29  ;;  %v632_v56 = vsub.f32 %v497_v6, %v631_v26 }
 0x74a   :  { %v638_v57 = vmul.f32 %v632_v56, %v632_v56 }
 0x74c   :  { %v639_v58 = vsel %vm605_vm7, %v638_v57, 0.0 }
 0x74d   :  { %v640_v59 = vrot.slane %v639_v58, 4 }
 0x74f   :  { %v641_v60 = vadd.f32 %v640_v59, %v639_v58 }
 0x751   :  { %v642_v61 = vrot.slane %v641_v60, 2 }
 0x753   :  { %v643_v62 = vadd.f32 %v642_v61, %v641_v60 }
 0x755   :  { %v644_v0 = vrot.slane %v643_v62, 1 }
 0x757   :  { %v645_v63 = vadd.f32 %v644_v0, %v643_v62 }
 0x797   :  { %v586_v32 = vpop.f32.mrb[4].mxu0 }
 0x798   :  { %v587_v33 = vadd.f32 %v586_v32, %v510_v30  ;;  %v588_v34 = vpop.f32.mrb[5].mxu0 }
 0x799   :  { %v589_v35 = vadd.f32 %v588_v34, %v514_v31  ;;  %v1001_v34 = vmov 1983009808  }
 0x79a   :  { %v848_v36 = vmul.f32 -1.442695, %v587_v33 }
 0x79b   :  { %v849_v37 = vmul.f32 -1.442695, %v589_v35  ;;  %v816_v35 = vunpack.c.l.s4 %v1001_v34 }
 0x79c   :  { %949 = vpow2.f32 %v848_v36  ;;  %v851_v36 = vld [vmem:[%s1151_s2 + $0xc] ss:$0 sm:$0xff] }
 0x79d   :  { %951 = vpow2.f32 %v849_v37  ;;  %v817_v37 = vunpack.c.0.s8 %v816_v35 }
 0x7a6   :  { %v950_v38 = vpop.eup %949 }
 0x7a7   :  { %v952_v39 = vpop.eup %951  ;;  %v597_v40 = vadd.f32 1.0, %v950_v38 }
 0x7a8   :  { %v598_v41 = vadd.f32 1.0, %v952_v39 }
 0x7a9   :  { %953 = vrcp.f32 %v597_v40 }
 0x7aa   :  { %955 = vrcp.f32 %v598_v41 }
 0x7b3   :  { %v1119_v42 = vpop.eup %953 }
 0x7b4   :  { %v1121_v43 = vpop.eup %955 }
 0x7b5   :  { %v814_v44 = vcombine.low %v1119_v42, %v1121_v43 }
 0x7ba   :  { %v635_v45 = vpop.permute.xlu0 %634 }
 0x7bb   :  { %v637_v46 = vsub.f32 %v497_v6, %v635_v45 }
 0x7bd   :  { %v647_v47 = vmul.f32 %v637_v46, %v637_v46 }
 0x7bf   :  { %v648_v49 = vsel %vm614_vm6, %v647_v47, 0.0 }
 0x7c0   :  { %v649_v50 = vrot.slane %v648_v49, 4 }
 0x7c2   :  { %v650_v51 = vadd.f32 %v649_v50, %v648_v49 }
 0x7c4   :  { %v651_v52 = vrot.slane %v650_v51, 2 }
 0x7c6   :  { %v652_v53 = vadd.f32 %v651_v52, %v650_v51 }
 0x7c8   :  { %v653_v54 = vrot.slane %v652_v53, 1 }
 0x7ca   :  { %v654_v55 = vadd.f32 %v653_v54, %v652_v53 }
 0x7cc   :  { %656 = vrot.lane.b32.xlu1 %v654_v55, %s993_s0 }
 0x83e   :  { %v657_v2 = vpop.permute.xlu1 %656 }
 0x83f   :  { %v659_v3 = vadd.f32 %v657_v2, %v645_v63 }
 0x841   :  { %v660_v5 = vmul.f32 0.25, %v659_v3 }
 0x843   :  { %v661_v4 = vadd.f32 1e-05, %v660_v5 }
 0x845   :  { %957 = vrsqrt.f32 %v661_v4 }
 0x84f   :  { %v958_v6 = vpop.eup %957 }
 0x850   :  { %v670_v10 = vrot.slane %v958_v6, %v669_v1 }
 0x852   :  { %v677_v11 = vrot.slane %v670_v10, %v669_v1 }
 0x854   :  { %678 = vrot.lane.b32.xlu0 %v677_v11, %s997_s20 }
 0x8c6   :  { %v679_v13 = vpop.permute.xlu0 %678 }
 0x8c7   :  { %v681_v14 = vmul.f32 %v679_v13, %v603_v12 }
 0x8c9   :  { %v686_v15 = vrot.slane %v681_v14, %v1059_v27 }
 0x8cb   :  { %701 = vrot.lane.b32.xlu0 %v686_v15, %s998_s23  ;;  %687 = vrot.lane.b32.xlu1 %v686_v15, %s999_s24 }
 0x8cf   :  { %705 = vrot.lane.b32.xlu0 %v850_v16, %s998_s23  ;;  %696 = vrot.lane.b32.xlu1 %v850_v16, %s999_s24 }
 0x93d   :  { %v702_v20 = vpop.permute.xlu0 %701  ;;  %v688_v21 = vpop.permute.xlu1 %687 }
 0x93e   :  { %v704_v22 = vmul.f32 %v702_v20, %v637_v46  ;;  %v690_v23 = vmul.f32 %v688_v21, %v632_v56 }
 0x941   :  { %v706_v25 = vpop.permute.xlu0 %705  ;;  %v697_v27 = vpop.permute.xlu1 %696 }
 0x942   :  { %v708_v26 = vadd.f32 %v706_v25, %v704_v22  ;;  %v699_v28 = vadd.f32 %v697_v27, %v690_v23 }
 0x944   :  { %959 = vtanh.f32 %v708_v26 }
 0x945   :  { %961 = vtanh.f32 %v699_v28 }
 0x94e   :  { %v960_v29 = vpop.eup %959 }
 0x94f   :  { %v962_v30 = vpop.eup %961  ;;  %715 = vrot.lane.b32.xlu0 %v960_v29, %s997_s20 }
 0x950   :  { %711 = vrot.lane.b32.xlu1 %v962_v30, %s997_s20 }
 0x954   :  { %802 = vrot.lane.b32.xlu1 %v1095_v48, %s1000_s26  ;;  %v820_v48 = vsub.s32 %v817_v37, %v1056_v24 }
 0x956   :  { %v821_v49 = vrot.slane %v814_v44, %v820_v48 }
 0x9c1   :  { %v716_v31 = vpop.permute.xlu0 %715 }
 0x9c2   :  { %v712_v32 = vpop.permute.xlu1 %711 }
 0x9c3   :  { %v718_v33 = vsel %vm197_vm4, %v712_v32, %v716_v31 }
 0x9c4   :  { %901 = vmatmul.mubr.msk.f32.vlgmr.msra.gmra.mrb[4].mxu1 %vm38_vm1, %v718_v33 }
 0x9c6   :  { %v803_v41 = vpop.permute.xlu1 %802 }
 0xa97   :  { %v797_v38 = vpop.f32.mrb[4].mxu1 }
 0xa98   :  { %v798_v39 = vadd.f32 %v851_v36, %v797_v38  ;;  %v902_v40 = vpop.f32.mrb[5].mxu1 }
 0xa9a   :  { %v806_v45 = vsel %vm805_vm8, %v798_v39, %v803_v41 }
 0xa9b   :  { %v808_v46 = vsel %vm807_vm9, %v806_v45, %v803_v41 }
 0xa9c   :  { %v810_v47 = vsel %vm809_vm10, %v808_v46, 0.0 }
 0xa9d   :  { %v828_v50 = vrot.slane %v810_v47, %v820_v48 }
 0xa9f   :  { %v829_v51 = vcombine.low %v821_v49, %v828_v50 }
 0xaa1   :  { %831 = vst [vmem:[%s1152_s3] sm:$0x3f] %v829_v51 }
 0xaa2   :  { %836 = vsyncpa [#allocation3], 1 }

</bundles_post_ra>
